<compile_context>
chip_gen: v5e
topology: v5e:2x2
jax: 0.10.0
libtpu: 0.0.40
codegen_flags: <defaults>
</compile_context>

<pallas_src>
import functools

import jax
import jax.numpy as jnp
from jax.experimental import pallas as pl
from jax.experimental.pallas import tpu as pltpu

NUM_HEADS = 5
DIM_QKV = 36                          # dim_q = dim_k = dim_v = 36
DIM_HIDDEN = 10                       # per-head Q/K projection width
DIM_OUT_HEAD = 10                     # per-head V/output width
DIM_MLP = NUM_HEADS * DIM_OUT_HEAD    # 50
SCALE = 1.0 / float(DIM_HIDDEN) ** 0.5


def _elu(x):
    # torch.nn.ELU(alpha=1.0); exp(min(x,0)) keeps the unselected branch finite.
    return jnp.where(x > 0, x, jnp.exp(jnp.minimum(x, 0.0)) - 1.0)


def perf_player_kernel(q_ref, obs_ref, mask_ref,
                       wq_ref, bq_ref, wk_ref, bk_ref, wv_ref, bv_ref,
                       rts_t_ref, rt_ref,
                       w1_ref, b1_ref, w2_ref, b2_ref, wo_ref, bo_ref,
                       out_ref):
    bt, n = mask_ref.shape
    bn = bt * n
    hd = DIM_MLP

    q = q_ref[...]              # [bt, 36]   bf16 gathered query rows
    obs = obs_ref[...]          # [bt*N, 36] bf16 flattened keys/values
    mask = mask_ref[...]        # [bt, N]    f32, 1.0 = attend, 0.0 = masked

    # --- projections: 3 wide [36->50] matmuls with M = bt / bt*N (f32 acc) ---
    qp = jnp.dot(q, wq_ref[...], preferred_element_type=jnp.float32) + bq_ref[...]     # [bt, 50]
    kp = jnp.dot(obs, wk_ref[...], preferred_element_type=jnp.float32) + bk_ref[...]   # [bn, 50]
    vp = jnp.dot(obs, wv_ref[...], preferred_element_type=jnp.float32) + bv_ref[...]   # [bn, 50]

    # --- scores: ONE matmul with M = bt*N (no per-example batched matmuls) ---
    # u[b*N+j, c] = qp[b, c] * kp[b*N+j, c]  (VPU broadcast along the sequence
    # axis; the [bn,50] <-> [bt,N,50] regroupings are layout no-ops for N % 8 == 0).
    u = (qp[:, None, :] * kp.reshape(bt, n, hd)).reshape(bn, hd)                        # [bn, 50]
    # rts_t = rt.T * (1/sqrt(dim_hidden)) -> per-head scaled dot products.
    s = jnp.dot(u, rts_t_ref[...], preferred_element_type=jnp.float32)                  # [bn, 5]

    # --- masked softmax over the sequence axis (per batch row, per head) -----
    s3 = s.reshape(bt, n, NUM_HEADS)
    s3 = jnp.where(mask[:, :, None] > 0.0, s3, -1e30)
    m = jnp.max(s3, axis=1, keepdims=True)                                               # [bt,1,5]
    p = jnp.exp(s3 - m)
    denom = jnp.sum(p, axis=1, keepdims=True)
    p = p * pl.reciprocal(denom, approx=True)                                            # [bt,N,5]

    # --- prob -> value: ONE matmul (M = bt*N) + a segment-sum over N ---------
    # pe[b*N+j, c] = p[b, j, head(c)]  (each head's prob lands directly in its
    # 10-column block; no redundant reduction over the head axis).
    pe = jnp.dot(p.reshape(bn, NUM_HEADS), rt_ref[...],
                 preferred_element_type=jnp.float32)                                     # [bn, 50]
    attn = jnp.sum((pe * vp).reshape(bt, n, hd), axis=1)                                 # [bt, 50]

    # --- MLP head (out/out2 fused into one [50, 2] matmul) -------------------
    h1 = _elu(jnp.dot(attn, w1_ref[...], preferred_element_type=jnp.float32) + b1_ref[...])
    h2 = _elu(jnp.dot(h1, w2_ref[...], preferred_element_type=jnp.float32) + b2_ref[...])
    out_ref[...] = jnp.dot(h2, wo_ref[...], preferred_element_type=jnp.float32) + bo_ref[...]


def init_params(key):
    """Per-head / per-output-head parameters (PyTorch-style, W stored as [in, out])."""
    ks = jax.random.split(key, 14)
    s = 0.1
    f32 = jnp.float32
    n = jax.random.normal
    return {
        "wq": n(ks[0], (NUM_HEADS, DIM_QKV, DIM_HIDDEN), f32) * s,
        "bq": n(ks[1], (NUM_HEADS, DIM_HIDDEN), f32) * s,
        "wk": n(ks[2], (NUM_HEADS, DIM_QKV, DIM_HIDDEN), f32) * s,
        "bk": n(ks[3], (NUM_HEADS, DIM_HIDDEN), f32) * s,
        "wv": n(ks[4], (NUM_HEADS, DIM_QKV, DIM_OUT_HEAD), f32) * s,
        "bv": n(ks[5], (NUM_HEADS, DIM_OUT_HEAD), f32) * s,
        "w1": n(ks[6], (DIM_MLP, DIM_MLP), f32) * s,    # attn_linear
        "b1": n(ks[7], (1, DIM_MLP), f32) * s,
        "w2": n(ks[8], (DIM_MLP, DIM_MLP), f32) * s,    # nonlinear1
        "b2": n(ks[9], (1, DIM_MLP), f32) * s,
        "wo1": n(ks[10], (DIM_MLP, 1), f32) * s,        # out
        "bo1": n(ks[11], (1, 1), f32) * s,
        "wo2": n(ks[12], (DIM_MLP, 1), f32) * s,        # out2
        "bo2": n(ks[13], (1, 1), f32) * s,
    }


def fuse_params(p):
    """Concatenate / cast weights ONCE (outside the per-step call)."""
    bf16 = jnp.bfloat16
    wq = jnp.concatenate([p["wq"][h] for h in range(NUM_HEADS)], axis=1).astype(bf16)   # [36, 50]
    bq = p["bq"].reshape(1, NUM_HEADS * DIM_HIDDEN)                                     # [1, 50] f32
    wk = jnp.concatenate([p["wk"][h] for h in range(NUM_HEADS)], axis=1).astype(bf16)   # [36, 50]
    bk = p["bk"].reshape(1, NUM_HEADS * DIM_HIDDEN)
    wv = jnp.concatenate([p["wv"][h] for h in range(NUM_HEADS)], axis=1).astype(bf16)   # [36, 50]
    bv = p["bv"].reshape(1, NUM_HEADS * DIM_OUT_HEAD)
    # block indicator: rt[h, c] = 1.0 iff column c belongs to head h
    rt = ((jnp.arange(DIM_MLP) // DIM_OUT_HEAD)[None, :]
          == jnp.arange(NUM_HEADS)[:, None]).astype(jnp.float32)                        # [5, 50]
    rts_t = rt.T * SCALE                                                                # [50, 5], scale folded in
    wo = jnp.concatenate([p["wo1"], p["wo2"]], axis=1)                                  # [50, 2]
    bo = jnp.concatenate([p["bo1"], p["bo2"]], axis=1)                                  # [1, 2]
    return (wq, bq, wk, bk, wv, bv, rts_t, rt,
            p["w1"], p["b1"], p["w2"], p["b2"], wo, bo)


def _choose_block_b(B, N):
    """N-aware batch tile.

    Budget: ~2.5 KB/row worst case of f32 intermediates (incl. the 128-lane
    padded [., 5] score/prob tensors), so Bt*N <= 8192 keeps peak live VMEM
    around 10-20 MB -- safely inside the 32 MiB default scoped VMEM on v5e,
    v6e and v7x (64 MiB physical).  For small N this gives Bt in the 512-1024
    range instead of 128 (per-grid-step overhead amortised).
    """
    rows_cap = 8192
    bt_cap = max(8, (min(1024, rows_cap // max(N, 1)) // 8) * 8)
    if B > bt_cap:
        return bt_cap
    if B >= 16:
        # Split into >= 2 tiles so ("parallel",) can shard across the 2
        # TensorCores on v7x; harmless extra grid step on v5e/v6e.
        half = -(-B // 2)
        half = -(-half // 8) * 8
        if half < B:
            return half
    return B   # single tile: block == full array shapes (always legal)


@functools.partial(jax.jit, static_argnames=("block_b",))
def perf_player_forward(fused, obs, query_idxs, masks, block_b=None):
    B, N, F = obs.shape
    # glue: queries = obs.reshape(B*N, F)[query_idxs + arange(B) * N]
    # keys/values and queries cast once to bf16 for the MXU projections
    # (f32 accumulation in-kernel; softmax & MLP stay f32).
    # TODO(synk): if the producer of `obs` can emit bf16 directly, drop this cast.
    flat = obs.reshape(B * N, F).astype(jnp.bfloat16)
    idx = query_idxs.astype(jnp.int32) + jnp.arange(B, dtype=jnp.int32) * N
    q = flat[idx]                                    # [B, F] gathered query rows
    mask = masks.astype(jnp.float32)                 # [B, N]

    bt = _choose_block_b(B, N) if block_b is None else int(block_b)
    bt = min(bt, B)
    if bt < B:
        bt = max(8, (bt // 8) * 8)
        if bt >= B:
            bt = B
    # No padding of any input: the last tile may run past B; Pallas clamps the
    # DMAs (OOB reads = garbage rows discarded, OOB output writes dropped).
    nb = pl.cdiv(B, bt)

    weights = fused
    in_specs = [
        pl.BlockSpec((bt, F), lambda i: (i, 0)),          # q tile
        # TODO(synk): on v5e, if the obs DMA shows up exposed at large N,
        # deepen its pipeline with pipeline_mode=pl.Buffered(3).
        pl.BlockSpec((bt * N, F), lambda i: (i, 0)),      # obs tile (flattened)
        pl.BlockSpec((bt, N), lambda i: (i, 0)),          # mask tile
    ] + [pl.BlockSpec(w.shape, lambda i: (0, 0)) for w in weights]   # resident weights

    out = pl.pallas_call(
        perf_player_kernel,
        out_shape=jax.ShapeDtypeStruct((B, 2), jnp.float32),
        grid=(nb,),
        in_specs=in_specs,
        out_specs=pl.BlockSpec((bt, 2), lambda i: (i, 0)),
        compiler_params=pltpu.CompilerParams(
            dimension_semantics=("parallel",)),           # 2 TCs on v7x; no-op on v5e/v6e
    )(q, flat, mask, *weights)

    return out[:, 0:1], out[:, 1:2]


def reference_forward(p, obs, query_idxs, masks):
    """Pure-JAX f32 per-head reference (mirrors the PyTorch module) for validation."""
    B, N, F = obs.shape
    hp = jax.lax.Precision.HIGHEST
    flat = obs.reshape(B * N, F)
    q = flat[query_idxs + jnp.arange(B, dtype=query_idxs.dtype) * N]
    mask = masks.astype(jnp.float32)
    heads = []
    for h in range(NUM_HEADS):
        qh = jnp.dot(q, p["wq"][h], precision=hp) + p["bq"][h]
        kh = jnp.einsum("bnf,fd->bnd", obs, p["wk"][h], precision=hp) + p["bk"][h]
        vh = jnp.einsum("bnf,fd->bnd", obs, p["wv"][h], precision=hp) + p["bv"][h]
        s = jnp.einsum("bd,bnd->bn", qh, kh, precision=hp) * SCALE
        s = jnp.where(mask > 0, s, -1e30)
        pr = jax.nn.softmax(s, axis=-1)
        heads.append(jnp.einsum("bn,bnd->bd", pr, vh, precision=hp))
    attn = jnp.concatenate(heads, axis=-1)
    h1 = _elu(jnp.dot(attn, p["w1"], precision=hp) + p["b1"])
    h2 = _elu(jnp.dot(h1, p["w2"], precision=hp) + p["b2"])
    o1 = jnp.dot(h2, p["wo1"], precision=hp) + p["bo1"]
    o2 = jnp.dot(h2, p["wo2"], precision=hp) + p["bo2"]
    return o1, o2


if __name__ == "__main__":
    key = jax.random.PRNGKey(0)
    kpar, kobs, kobs2, kmask2, kidx2 = jax.random.split(key, 5)
    params = init_params(kpar)
    fused = fuse_params(params)

    # --- small demo config (single tile: blocks == full arrays) --------------
    B, N, F = 2, 8, DIM_QKV
    obs = jax.random.normal(kobs, (B, N, F), jnp.float32)
    query_idxs = jnp.array([3, 5], dtype=jnp.int32)
    masks = jnp.ones((B, N), jnp.float32).at[:, -1].set(0.0)   # mask last position

    out1, out2 = perf_player_forward(fused, obs, query_idxs, masks)
    jax.block_until_ready((out1, out2))
    assert out1.shape == (B, 1) and out2.shape == (B, 1)
    assert bool(jnp.all(jnp.isfinite(out1))) and bool(jnp.all(jnp.isfinite(out2)))

    ref1, ref2 = reference_forward(params, obs, query_idxs, masks)
    # bf16 projection inputs/weights (perf-review request) -> small deviation
    # from the exact f32 reference; softmax/MLP stay f32.
    assert bool(jnp.allclose(out1, ref1, rtol=5e-2, atol=2.5e-2))
    assert bool(jnp.allclose(out2, ref2, rtol=5e-2, atol=2.5e-2))

    # --- second config: multi-step grid + batch not divisible by the tile ----
    B2 = 20
    obs2 = jax.random.normal(kobs2, (B2, N, F), jnp.float32)
    query_idxs2 = jax.random.randint(kidx2, (B2,), 0, N, dtype=jnp.int32)
    masks2 = (jax.random.uniform(kmask2, (B2, N)) > 0.3).astype(jnp.float32)
    masks2 = masks2.at[:, 0].set(1.0)   # no fully-masked rows
    o1, o2 = perf_player_forward(fused, obs2, query_idxs2, masks2)
    jax.block_until_ready((o1, o2))
    r1, r2 = reference_forward(params, obs2, query_idxs2, masks2)
    assert bool(jnp.allclose(o1, r1, rtol=5e-2, atol=2.5e-2))
    assert bool(jnp.allclose(o2, r2, rtol=5e-2, atol=2.5e-2))

    print("KERNEL_OK")
</pallas_src>

<mosaic_0001>
module attributes {stable_mosaic.version = 11 : i64} {
  func.func @perf_player_kernel(%arg0: i32, %arg1: memref<2x36xbf16, #tpu.memory_space<vmem>>, %arg2: memref<16x36xbf16, #tpu.memory_space<vmem>>, %arg3: memref<2x8xf32, #tpu.memory_space<vmem>>, %arg4: memref<36x50xbf16, #tpu.memory_space<vmem>>, %arg5: memref<1x50xf32, #tpu.memory_space<vmem>>, %arg6: memref<36x50xbf16, #tpu.memory_space<vmem>>, %arg7: memref<1x50xf32, #tpu.memory_space<vmem>>, %arg8: memref<36x50xbf16, #tpu.memory_space<vmem>>, %arg9: memref<1x50xf32, #tpu.memory_space<vmem>>, %arg10: memref<50x5xf32, #tpu.memory_space<vmem>>, %arg11: memref<5x50xf32, #tpu.memory_space<vmem>>, %arg12: memref<50x50xf32, #tpu.memory_space<vmem>>, %arg13: memref<1x50xf32, #tpu.memory_space<vmem>>, %arg14: memref<50x50xf32, #tpu.memory_space<vmem>>, %arg15: memref<1x50xf32, #tpu.memory_space<vmem>>, %arg16: memref<50x2xf32, #tpu.memory_space<vmem>>, %arg17: memref<1x2xf32, #tpu.memory_space<vmem>>, %arg18: memref<2x2xf32, #tpu.memory_space<vmem>>) attributes {dimension_semantics = [#tpu.dimension_semantics<parallel>], iteration_bounds = array<i64: 1>, scalar_prefetch = 0 : i64, scratch_operands = 0 : i64, tpu.core_type = #tpu.core_type<tc>, window_params = [{transform_indices = @transform_0, window_bounds = array<i64: 2, 36>}, {transform_indices = @transform_1, window_bounds = array<i64: 16, 36>}, {transform_indices = @transform_2, window_bounds = array<i64: 2, 8>}, {pipeline_mode = #tpu.pipeline_mode<synchronous>, transform_indices = @transform_3, window_bounds = array<i64: 36, 50>}, {pipeline_mode = #tpu.pipeline_mode<synchronous>, transform_indices = @transform_4, window_bounds = array<i64: 1, 50>}, {pipeline_mode = #tpu.pipeline_mode<synchronous>, transform_indices = @transform_5, window_bounds = array<i64: 36, 50>}, {pipeline_mode = #tpu.pipeline_mode<synchronous>, transform_indices = @transform_6, window_bounds = array<i64: 1, 50>}, {pipeline_mode = #tpu.pipeline_mode<synchronous>, transform_indices = @transform_7, window_bounds = array<i64: 36, 50>}, {pipeline_mode = #tpu.pipeline_mode<synchronous>, transform_indices = @transform_8, window_bounds = array<i64: 1, 50>}, {pipeline_mode = #tpu.pipeline_mode<synchronous>, transform_indices = @transform_9, window_bounds = array<i64: 50, 5>}, {pipeline_mode = #tpu.pipeline_mode<synchronous>, transform_indices = @transform_10, window_bounds = array<i64: 5, 50>}, {pipeline_mode = #tpu.pipeline_mode<synchronous>, transform_indices = @transform_11, window_bounds = array<i64: 50, 50>}, {pipeline_mode = #tpu.pipeline_mode<synchronous>, transform_indices = @transform_12, window_bounds = array<i64: 1, 50>}, {pipeline_mode = #tpu.pipeline_mode<synchronous>, transform_indices = @transform_13, window_bounds = array<i64: 50, 50>}, {pipeline_mode = #tpu.pipeline_mode<synchronous>, transform_indices = @transform_14, window_bounds = array<i64: 1, 50>}, {pipeline_mode = #tpu.pipeline_mode<synchronous>, transform_indices = @transform_15, window_bounds = array<i64: 50, 2>}, {pipeline_mode = #tpu.pipeline_mode<synchronous>, transform_indices = @transform_16, window_bounds = array<i64: 1, 2>}, {transform_indices = @transform_17, window_bounds = array<i64: 2, 2>}]} {
    %c0 = arith.constant 0 : index
    %c0_0 = arith.constant 0 : index
    %0 = vector.load %arg1[%c0, %c0_0] : memref<2x36xbf16, #tpu.memory_space<vmem>>, vector<2x36xbf16>
    %c0_1 = arith.constant 0 : index
    %c0_2 = arith.constant 0 : index
    %1 = vector.load %arg2[%c0_1, %c0_2] : memref<16x36xbf16, #tpu.memory_space<vmem>>, vector<16x36xbf16>
    %c0_3 = arith.constant 0 : index
    %c0_4 = arith.constant 0 : index
    %2 = vector.load %arg3[%c0_3, %c0_4] : memref<2x8xf32, #tpu.memory_space<vmem>>, vector<2x8xf32>
    %c0_5 = arith.constant 0 : index
    %c0_6 = arith.constant 0 : index
    %3 = vector.load %arg4[%c0_5, %c0_6] : memref<36x50xbf16, #tpu.memory_space<vmem>>, vector<36x50xbf16>
    %cst = arith.constant dense<0.000000e+00> : vector<2x50xf32>
    %4 = tpu.matmul %0, %3, %cst {dimension_numbers = #tpu.dot_dimension_numbers<[1], [0], [0], [1], [0, 0, 1, 1], [], []>} : vector<2x36xbf16>, vector<36x50xbf16>, vector<2x50xf32> -> vector<2x50xf32>
    %c0_7 = arith.constant 0 : index
    %c0_8 = arith.constant 0 : index
    %5 = vector.load %arg5[%c0_7, %c0_8] : memref<1x50xf32, #tpu.memory_space<vmem>>, vector<1x50xf32>
    %6 = vector.broadcast %5 : vector<1x50xf32> to vector<2x50xf32>
    %7 = arith.addf %4, %6 : vector<2x50xf32>
    %c0_9 = arith.constant 0 : index
    %c0_10 = arith.constant 0 : index
    %8 = vector.load %arg6[%c0_9, %c0_10] : memref<36x50xbf16, #tpu.memory_space<vmem>>, vector<36x50xbf16>
    %cst_11 = arith.constant dense<0.000000e+00> : vector<16x50xf32>
    %9 = tpu.matmul %1, %8, %cst_11 {dimension_numbers = #tpu.dot_dimension_numbers<[1], [0], [0], [1], [0, 0, 1, 1], [], []>} : vector<16x36xbf16>, vector<36x50xbf16>, vector<16x50xf32> -> vector<16x50xf32>
    %c0_12 = arith.constant 0 : index
    %c0_13 = arith.constant 0 : index
    %10 = vector.load %arg7[%c0_12, %c0_13] : memref<1x50xf32, #tpu.memory_space<vmem>>, vector<1x50xf32>
    %11 = vector.broadcast %10 : vector<1x50xf32> to vector<16x50xf32>
    %12 = arith.addf %9, %11 : vector<16x50xf32>
    %c0_14 = arith.constant 0 : index
    %c0_15 = arith.constant 0 : index
    %13 = vector.load %arg8[%c0_14, %c0_15] : memref<36x50xbf16, #tpu.memory_space<vmem>>, vector<36x50xbf16>
    %cst_16 = arith.constant dense<0.000000e+00> : vector<16x50xf32>
    %14 = tpu.matmul %1, %13, %cst_16 {dimension_numbers = #tpu.dot_dimension_numbers<[1], [0], [0], [1], [0, 0, 1, 1], [], []>} : vector<16x36xbf16>, vector<36x50xbf16>, vector<16x50xf32> -> vector<16x50xf32>
    %c0_17 = arith.constant 0 : index
    %c0_18 = arith.constant 0 : index
    %15 = vector.load %arg9[%c0_17, %c0_18] : memref<1x50xf32, #tpu.memory_space<vmem>>, vector<1x50xf32>
    %16 = vector.broadcast %15 : vector<1x50xf32> to vector<16x50xf32>
    %17 = arith.addf %14, %16 : vector<16x50xf32>
    %18 = vector.shape_cast %7 : vector<2x50xf32> to vector<2x1x50xf32>
    %19 = vector.shape_cast %12 : vector<16x50xf32> to vector<2x8x50xf32>
    %20 = vector.broadcast %18 : vector<2x1x50xf32> to vector<2x8x50xf32>
    %21 = arith.mulf %20, %19 : vector<2x8x50xf32>
    %22 = vector.shape_cast %21 : vector<2x8x50xf32> to vector<16x50xf32>
    %c0_19 = arith.constant 0 : index
    %c0_20 = arith.constant 0 : index
    %23 = vector.load %arg10[%c0_19, %c0_20] : memref<50x5xf32, #tpu.memory_space<vmem>>, vector<50x5xf32>
    %cst_21 = arith.constant dense<0.000000e+00> : vector<16x5xf32>
    %24 = tpu.matmul %22, %23, %cst_21 {dimension_numbers = #tpu.dot_dimension_numbers<[1], [0], [0], [1], [0, 0, 1, 1], [], []>} : vector<16x50xf32>, vector<50x5xf32>, vector<16x5xf32> -> vector<16x5xf32>
    %25 = vector.shape_cast %24 : vector<16x5xf32> to vector<2x8x5xf32>
    %26 = vector.shape_cast %2 : vector<2x8xf32> to vector<2x8x1xf32>
    %cst_22 = arith.constant 0.000000e+00 : f32
    %27 = vector.broadcast %cst_22 : f32 to vector<2x8x1xf32>
    %28 = arith.cmpf ogt, %26, %27 : vector<2x8x1xf32>
    %cst_23 = arith.constant -1.000000e+30 : f32
    %29 = vector.shape_cast %28 : vector<2x8x1xi1> to vector<2x8x1xi1>
    %30 = vector.broadcast %29 : vector<2x8x1xi1> to vector<2x8x5xi1>
    %31 = vector.broadcast %cst_23 : f32 to vector<2x8x5xf32>
    %32 = arith.select %30, %25, %31 : vector<2x8x5xi1>, vector<2x8x5xf32>
    %cst_24 = arith.constant dense<0xFF800000> : vector<2x5xf32>
    %33 = vector.multi_reduction <maximumf>, %32, %cst_24 [1] : vector<2x8x5xf32> to vector<2x5xf32>
    %34 = vector.shape_cast %33 : vector<2x5xf32> to vector<2x1x5xf32>
    %35 = vector.broadcast %34 : vector<2x1x5xf32> to vector<2x8x5xf32>
    %36 = arith.subf %32, %35 : vector<2x8x5xf32>
    %37 = math.exp %36 : vector<2x8x5xf32>
    %cst_25 = arith.constant dense<0.000000e+00> : vector<2x5xf32>
    %38 = vector.multi_reduction <add>, %37, %cst_25 [1] : vector<2x8x5xf32> to vector<2x5xf32>
    %39 = vector.shape_cast %38 : vector<2x5xf32> to vector<2x1x5xf32>
    %40 = tpu.reciprocal %39 {approx = true} : vector<2x1x5xf32> -> vector<2x1x5xf32>
    %41 = vector.broadcast %40 : vector<2x1x5xf32> to vector<2x8x5xf32>
    %42 = arith.mulf %37, %41 : vector<2x8x5xf32>
    %43 = vector.shape_cast %42 : vector<2x8x5xf32> to vector<16x5xf32>
    %c0_26 = arith.constant 0 : index
    %c0_27 = arith.constant 0 : index
    %44 = vector.load %arg11[%c0_26, %c0_27] : memref<5x50xf32, #tpu.memory_space<vmem>>, vector<5x50xf32>
    %cst_28 = arith.constant dense<0.000000e+00> : vector<16x50xf32>
    %45 = tpu.matmul %43, %44, %cst_28 {dimension_numbers = #tpu.dot_dimension_numbers<[1], [0], [0], [1], [0, 0, 1, 1], [], []>} : vector<16x5xf32>, vector<5x50xf32>, vector<16x50xf32> -> vector<16x50xf32>
    %46 = arith.mulf %45, %17 : vector<16x50xf32>
    %47 = vector.shape_cast %46 : vector<16x50xf32> to vector<2x8x50xf32>
    %cst_29 = arith.constant dense<0.000000e+00> : vector<2x50xf32>
    %48 = vector.multi_reduction <add>, %47, %cst_29 [1] : vector<2x8x50xf32> to vector<2x50xf32>
    %c0_30 = arith.constant 0 : index
    %c0_31 = arith.constant 0 : index
    %49 = vector.load %arg12[%c0_30, %c0_31] : memref<50x50xf32, #tpu.memory_space<vmem>>, vector<50x50xf32>
    %cst_32 = arith.constant dense<0.000000e+00> : vector<2x50xf32>
    %50 = tpu.matmul %48, %49, %cst_32 {dimension_numbers = #tpu.dot_dimension_numbers<[1], [0], [0], [1], [0, 0, 1, 1], [], []>} : vector<2x50xf32>, vector<50x50xf32>, vector<2x50xf32> -> vector<2x50xf32>
    %c0_33 = arith.constant 0 : index
    %c0_34 = arith.constant 0 : index
    %51 = vector.load %arg13[%c0_33, %c0_34] : memref<1x50xf32, #tpu.memory_space<vmem>>, vector<1x50xf32>
    %52 = vector.broadcast %51 : vector<1x50xf32> to vector<2x50xf32>
    %53 = arith.addf %50, %52 : vector<2x50xf32>
    %cst_35 = arith.constant 0.000000e+00 : f32
    %54 = vector.broadcast %cst_35 : f32 to vector<2x50xf32>
    %55 = arith.cmpf ogt, %53, %54 : vector<2x50xf32>
    %cst_36 = arith.constant 0.000000e+00 : f32
    %56 = vector.broadcast %cst_36 : f32 to vector<2x50xf32>
    %57 = arith.minimumf %53, %56 : vector<2x50xf32>
    %58 = math.exp %57 : vector<2x50xf32>
    %cst_37 = arith.constant 1.000000e+00 : f32
    %59 = vector.broadcast %cst_37 : f32 to vector<2x50xf32>
    %60 = arith.subf %58, %59 : vector<2x50xf32>
    %61 = arith.select %55, %53, %60 : vector<2x50xi1>, vector<2x50xf32>
    %c0_38 = arith.constant 0 : index
    %c0_39 = arith.constant 0 : index
    %62 = vector.load %arg14[%c0_38, %c0_39] : memref<50x50xf32, #tpu.memory_space<vmem>>, vector<50x50xf32>
    %cst_40 = arith.constant dense<0.000000e+00> : vector<2x50xf32>
    %63 = tpu.matmul %61, %62, %cst_40 {dimension_numbers = #tpu.dot_dimension_numbers<[1], [0], [0], [1], [0, 0, 1, 1], [], []>} : vector<2x50xf32>, vector<50x50xf32>, vector<2x50xf32> -> vector<2x50xf32>
    %c0_41 = arith.constant 0 : index
    %c0_42 = arith.constant 0 : index
    %64 = vector.load %arg15[%c0_41, %c0_42] : memref<1x50xf32, #tpu.memory_space<vmem>>, vector<1x50xf32>
    %65 = vector.broadcast %64 : vector<1x50xf32> to vector<2x50xf32>
    %66 = arith.addf %63, %65 : vector<2x50xf32>
    %cst_43 = arith.constant 0.000000e+00 : f32
    %67 = vector.broadcast %cst_43 : f32 to vector<2x50xf32>
    %68 = arith.cmpf ogt, %66, %67 : vector<2x50xf32>
    %cst_44 = arith.constant 0.000000e+00 : f32
    %69 = vector.broadcast %cst_44 : f32 to vector<2x50xf32>
    %70 = arith.minimumf %66, %69 : vector<2x50xf32>
    %71 = math.exp %70 : vector<2x50xf32>
    %cst_45 = arith.constant 1.000000e+00 : f32
    %72 = vector.broadcast %cst_45 : f32 to vector<2x50xf32>
    %73 = arith.subf %71, %72 : vector<2x50xf32>
    %74 = arith.select %68, %66, %73 : vector<2x50xi1>, vector<2x50xf32>
    %c0_46 = arith.constant 0 : index
    %c0_47 = arith.constant 0 : index
    %75 = vector.load %arg16[%c0_46, %c0_47] : memref<50x2xf32, #tpu.memory_space<vmem>>, vector<50x2xf32>
    %cst_48 = arith.constant dense<0.000000e+00> : vector<2x2xf32>
    %76 = tpu.matmul %74, %75, %cst_48 {dimension_numbers = #tpu.dot_dimension_numbers<[1], [0], [0], [1], [0, 0, 1, 1], [], []>} : vector<2x50xf32>, vector<50x2xf32>, vector<2x2xf32> -> vector<2x2xf32>
    %c0_49 = arith.constant 0 : index
    %c0_50 = arith.constant 0 : index
    %77 = vector.load %arg17[%c0_49, %c0_50] : memref<1x2xf32, #tpu.memory_space<vmem>>, vector<1x2xf32>
    %78 = vector.broadcast %77 : vector<1x2xf32> to vector<2x2xf32>
    %79 = arith.addf %76, %78 : vector<2x2xf32>
    %c0_51 = arith.constant 0 : index
    %c0_52 = arith.constant 0 : index
    %80 = vector.load %arg18[%c0_51, %c0_52] : memref<2x2xf32, #tpu.memory_space<vmem>>, vector<2x2xf32>
    tpu.vector_store %arg18[%c0_51, %c0_52], %79 {strides = array<i32>} : memref<2x2xf32, #tpu.memory_space<vmem>>, vector<2x2xf32>,
    return
  }
  func.func @transform_0(%arg0: i32) -> (i32, i32) {
    %c0_i32 = arith.constant 0 : i32
    %c0_i32_0 = arith.constant 0 : i32
    return %arg0, %c0_i32 : i32, i32
  }
  func.func @transform_1(%arg0: i32) -> (i32, i32) {
    %c0_i32 = arith.constant 0 : i32
    %c0_i32_0 = arith.constant 0 : i32
    return %arg0, %c0_i32 : i32, i32
  }
  func.func @transform_2(%arg0: i32) -> (i32, i32) {
    %c0_i32 = arith.constant 0 : i32
    %c0_i32_0 = arith.constant 0 : i32
    return %arg0, %c0_i32 : i32, i32
  }
  func.func @transform_3(%arg0: i32) -> (i32, i32) {
    %c0_i32 = arith.constant 0 : i32
    %c0_i32_0 = arith.constant 0 : i32
    %c0_i32_1 = arith.constant 0 : i32
    return %c0_i32, %c0_i32_0 : i32, i32
  }
  func.func @transform_4(%arg0: i32) -> (i32, i32) {
    %c0_i32 = arith.constant 0 : i32
    %c0_i32_0 = arith.constant 0 : i32
    %c0_i32_1 = arith.constant 0 : i32
    return %c0_i32, %c0_i32_0 : i32, i32
  }
  func.func @transform_5(%arg0: i32) -> (i32, i32) {
    %c0_i32 = arith.constant 0 : i32
    %c0_i32_0 = arith.constant 0 : i32
    %c0_i32_1 = arith.constant 0 : i32
    return %c0_i32, %c0_i32_0 : i32, i32
  }
  func.func @transform_6(%arg0: i32) -> (i32, i32) {
    %c0_i32 = arith.constant 0 : i32
    %c0_i32_0 = arith.constant 0 : i32
    %c0_i32_1 = arith.constant 0 : i32
    return %c0_i32, %c0_i32_0 : i32, i32
  }
  func.func @transform_7(%arg0: i32) -> (i32, i32) {
    %c0_i32 = arith.constant 0 : i32
    %c0_i32_0 = arith.constant 0 : i32
    %c0_i32_1 = arith.constant 0 : i32
    return %c0_i32, %c0_i32_0 : i32, i32
  }
  func.func @transform_8(%arg0: i32) -> (i32, i32) {
    %c0_i32 = arith.constant 0 : i32
    %c0_i32_0 = arith.constant 0 : i32
    %c0_i32_1 = arith.constant 0 : i32
    return %c0_i32, %c0_i32_0 : i32, i32
  }
  func.func @transform_9(%arg0: i32) -> (i32, i32) {
    %c0_i32 = arith.constant 0 : i32
    %c0_i32_0 = arith.constant 0 : i32
    %c0_i32_1 = arith.constant 0 : i32
    return %c0_i32, %c0_i32_0 : i32, i32
  }
  func.func @transform_10(%arg0: i32) -> (i32, i32) {
    %c0_i32 = arith.constant 0 : i32
    %c0_i32_0 = arith.constant 0 : i32
    %c0_i32_1 = arith.constant 0 : i32
    return %c0_i32, %c0_i32_0 : i32, i32
  }
  func.func @transform_11(%arg0: i32) -> (i32, i32) {
    %c0_i32 = arith.constant 0 : i32
    %c0_i32_0 = arith.constant 0 : i32
    %c0_i32_1 = arith.constant 0 : i32
    return %c0_i32, %c0_i32_0 : i32, i32
  }
  func.func @transform_12(%arg0: i32) -> (i32, i32) {
    %c0_i32 = arith.constant 0 : i32
    %c0_i32_0 = arith.constant 0 : i32
    %c0_i32_1 = arith.constant 0 : i32
    return %c0_i32, %c0_i32_0 : i32, i32
  }
  func.func @transform_13(%arg0: i32) -> (i32, i32) {
    %c0_i32 = arith.constant 0 : i32
    %c0_i32_0 = arith.constant 0 : i32
    %c0_i32_1 = arith.constant 0 : i32
    return %c0_i32, %c0_i32_0 : i32, i32
  }
  func.func @transform_14(%arg0: i32) -> (i32, i32) {
    %c0_i32 = arith.constant 0 : i32
    %c0_i32_0 = arith.constant 0 : i32
    %c0_i32_1 = arith.constant 0 : i32
    return %c0_i32, %c0_i32_0 : i32, i32
  }
  func.func @transform_15(%arg0: i32) -> (i32, i32) {
    %c0_i32 = arith.constant 0 : i32
    %c0_i32_0 = arith.constant 0 : i32
    %c0_i32_1 = arith.constant 0 : i32
    return %c0_i32, %c0_i32_0 : i32, i32
  }
  func.func @transform_16(%arg0: i32) -> (i32, i32) {
    %c0_i32 = arith.constant 0 : i32
    %c0_i32_0 = arith.constant 0 : i32
    %c0_i32_1 = arith.constant 0 : i32
    return %c0_i32, %c0_i32_0 : i32, i32
  }
  func.func @transform_17(%arg0: i32) -> (i32, i32) {
    %c0_i32 = arith.constant 0 : i32
    %c0_i32_0 = arith.constant 0 : i32
    return %arg0, %c0_i32 : i32, i32
  }
}

</mosaic_0001>

<bundles_post_ra>
// kernel: perf_player_forward.1
= control target key start
LH: loop header
LB: loop body
LE: loop exit
PB: predicated region body
PF: predicated region fallthrough
CT: control target
= control target key end

     0   :  { %s897_s0 = inlined_call_operand.vmem [shape: bf16[2,36], index: 0, kind: input, shape index: {}]   ;;  %s898_s1 = inlined_call_operand.vmem [shape: bf16[16,36], index: 1, kind: input, shape index: {}]   ;;  %s899_s2 = inlined_call_operand.vmem [shape: f32[2,8], index: 2, kind: input, shape index: {}]   ;;  %s900_s3 = inlined_call_operand.vmem [shape: bf16[36,50], index: 3, kind: input, shape index: {}]   ;;  %s901_s4 = inlined_call_operand.vmem [shape: f32[1,50], index: 4, kind: input, shape index: {}]   ;;  %s902_s5 = inlined_call_operand.hbm [shape: bf16[36,50], index: 5, kind: input, shape index: {}]   ;;  %s903_s6 = inlined_call_operand.vmem [shape: f32[1,50], index: 6, kind: input, shape index: {}]   ;;  %s904_s7 = inlined_call_operand.hbm [shape: bf16[36,50], index: 7, kind: input, shape index: {}]   ;;  %s905_s8 = inlined_call_operand.vmem [shape: f32[1,50], index: 8, kind: input, shape index: {}]   ;;  %s906_s9 = inlined_call_operand.vmem [shape: f32[50,5], index: 9, kind: input, shape index: {}]   ;;  %s907_s10 = inlined_call_operand.vmem [shape: f32[5,50], index: 10, kind: input, shape index: {}]   ;;  %s908_s11 = inlined_call_operand.vmem [shape: f32[50,50], index: 11, kind: input, shape index: {}]   ;;  %s909_s12 = inlined_call_operand.vmem [shape: f32[1,50], index: 12, kind: input, shape index: {}]   ;;  %s910_s13 = inlined_call_operand.vmem [shape: f32[50,50], index: 13, kind: input, shape index: {}]   ;;  %s911_s14 = inlined_call_operand.vmem [shape: f32[1,50], index: 14, kind: input, shape index: {}]   ;;  %s912_s15 = inlined_call_operand.vmem [shape: f32[50,2], index: 15, kind: input, shape index: {}]   ;;  %s913_s16 = inlined_call_operand.vmem [shape: f32[1,2], index: 16, kind: input, shape index: {}]   ;;  %s914_s17 = inlined_call_operand.vmem [shape: f32[2,2], index: 17, kind: output, shape index: {}]  }
   0x1   :  { %915 = sst [smem:[#allocation8_spill]] %s897_s0 }
   0x2   :  { %916 = sst [smem:[#allocation9_spill]] %s898_s1 }
   0x3   :  { %22 = vsyncpa [#allocation3], 0  ;;  %s38_s26 = sshll.u32 %s902_s5, 4  ;;  %s39_s26 = int_to_ptr.hbm [resolvable:$true] %s38_s26 }
   0x4   :  { %23 = vsyncpa [#allocation5], 0  ;;  %s648_s27 = smov [#allocation2]   ;;  %s53_s30 = sshll.u32 %s904_s7, 4  ;;  %s54_s30 = int_to_ptr.hbm [resolvable:$true] %s53_s30 }
   0x5   :  { %s40_s28 = sshll.u32 %s648_s27, 4  ;;  %s649_s18 = smov 64   ;;  %s41_s28 = int_to_ptr.vmem [resolvable:$true] %s40_s28 }
   0x6   :  { %s650_s19 = smov 4   ;;  %s651_s1 = smov [#allocation4]  }
   0x7   :  { %46 = dma.hbm_to_vmem [thread:$0]  %s39_s26, 320, %s41_s28, [#allocation3], %s649_s18, %s649_s18, %s650_s19  }
   0x8   :  { %s55_s20 = sshll.u32 %s651_s1, 4  ;;  %s56_s20 = int_to_ptr.vmem [resolvable:$true] %s55_s20 }
   0x9   :  { %61 = dma.hbm_to_vmem [thread:$0]  %s54_s30, 320, %s56_s20, [#allocation5], %s649_s18, %s649_s18, %s650_s19  }
   0xa   :  { %644 = dma.done.wait [#allocation3], 320  }
   0xb   :  { %645 = vsyncadd [#allocation3], 4294966976 }
   0xc   :  { %646 = dma.done.wait [#allocation5], 320  }
   0xd   :  { %647 = vsyncadd [#allocation5], 4294966976  ;;  %v97_v0 = vld [vmem:[%s900_s3 + $0x10] sm:$0x3]  ;;  %vm121_vm0 = vcmask 1041408   ;;  %v241_v7 = vld [vmem:[%s906_s9 + $0x28] sm:$0xff]  ;;  %v277_v20 = vlaneseq }
   0xe   :  { %v142_v1 = vld [vmem:[#allocation2 + $0x10] sm:$0x3]  ;;  %v111_v2 = vunpack.c.l.b16 %v97_v0  ;;  %v240_v8 = vld [vmem:[%s906_s9 + $0x20] sm:$0xff]  ;;  %v568_v11 = vld [vmem:[%s900_s3 + $0x8] sm:$0xff]  ;;  %s917_s19 = sld [smem:[#allocation9_spill]]  ;;  %vm117_vm1 = vcmask 293888  }
   0xf   :  { %v161_v3 = vunpack.c.l.b16 %v142_v1  ;;  %v242_v4 = vld [vmem:[%s906_s9 + $0x30] sm:$0x3]  ;;  %v570_v12 = vld [vmem:[#allocation2 + $0x8] sm:$0xff]  ;;  %v567_v13 = vld [vmem:[%s900_s3] sm:$0xff]  ;;  %s918_s5 = sld [smem:[#allocation8_spill]]  ;;  %v278_v22 = vshrl.u32 %v277_v20, 7 }
  0x10   :  { %v114_v5 = vpack.c.b16 %v111_v2, %v111_v2  ;;  %552 = vmatpush.msk.msra.mxu3 %vm121_vm0, %v242_v4  ;;  %v569_v14 = vld [vmem:[#allocation2] sm:$0xff]  ;;  %v239_v17 = vld [vmem:[%s906_s9 + $0x18] sm:$0xff]  ;;  %v238_v18 = vld [vmem:[%s906_s9 + $0x10] sm:$0xff]  ;;  %vm243_vm2 = vcmask 408576   ;;  %vm298_vm4 = vcmask 39936   ;;  %vm344_vm6 = vcmask 1044480  }
  0x11   :  { %v164_v6 = vpack.c.b16 %v161_v3, %v161_v3  ;;  %v237_v19 = vld [vmem:[%s906_s9 + $0x8] sm:$0xff]  ;;  %v236_v21 = vld [vmem:[%s906_s9] sm:$0xff]  ;;  %577 = vset.pattern.permute.xlu0 %v278_v22  ;;  %v571_v46 = vld [vmem:[#allocation4] sm:$0xff]  ;;  %vm400_vm7 = vcmask 1041409   ;;  %vm513_vm10 = vcmask 9216  }
  0x12   :  { %v123_v9 = vsel %vm121_vm0, %v114_v5, 0  ;;  %263 = vmatpush.msra.mxu3 %v241_v7  ;;  %v92_v23 = vld [vmem:[%s899_s2] sm:$0x3]  ;;  %v191_v40 = vld [vmem:[#allocation4 + $0x10] sm:$0x3] }
  0x13   :  { %v171_v10 = vsel %vm121_vm0, %v164_v6, 0  ;;  %130 = vmatpush.bf16.msra.mxu0 %v123_v9  ;;  %v276_v24 = vperm.slane %v92_v23, 0  ;;  %v283_v25 = vperm.slane %v92_v23, 1  ;;  %v578_v26 = vld [vmem:[%s901_s4] ss:$0 sm:$0xff]  ;;  %v205_v41 = vunpack.c.l.b16 %v191_v40 }
  0x14   :  { %178 = vmatpush.bf16.msra.mxu1 %v171_v10  ;;  %264 = vmatpush.msra.mxu3 %v240_v8  ;;  %v566_v15 = vld [vmem:[%s917_s19] sm:$0xff] }
  0x15   :  { %v89_v16 = vld [vmem:[%s918_s5] sm:$0x1]  ;;  %v208_v42 = vpack.c.b16 %v205_v41, %v205_v41 }
  0x16   :  { %265 = vmatpush.msra.mxu3 %v239_v17  ;;  %v579_v27 = vld [vmem:[%s903_s6] ss:$0 sm:$0xff] }
  0x17   :  { %131 = vmatpush.bf16.msra.mxu0 %v568_v11  ;;  %v212_v43 = vsel %vm121_vm0, %v208_v42, 0  ;;  %v572_v44 = vld [vmem:[#allocation4 + $0x8] sm:$0xff] }
  0x18   :  { %179 = vmatpush.bf16.msra.mxu1 %v570_v12  ;;  %266 = vmatpush.msra.mxu3 %v238_v18  ;;  %v337_v57 = vld [vmem:[%s907_s10] sm:$0x1f] }
  0x19   :  { %281 = vperm.xlu0 %577, %v276_v24   ;;  %219 = vmatpush.bf16.msra.mxu2 %v212_v43 }
  0x1a   :  { %267 = vmatpush.msra.mxu3 %v237_v19 }
  0x1b   :  { %132 = vmatpush.bf16.msra.mxu0 %v567_v13 }
  0x1c   :  { %180 = vmatpush.bf16.msra.mxu1 %v569_v14  ;;  %268 = vmatpush.msra.mxu3 %v236_v21 }
  0x1d   :  { %220 = vmatpush.bf16.msra.mxu2 %v572_v44 }
  0x1e   :  { %529 = vmatmul.msk.bf16.vlgmr.msra.gmra.mxu0 %vm117_vm1, %v89_v16 }
  0x1f   :  { %542 = vmatmul.msk.bf16.vlgmr.msra.gmra.mxu1 %vm117_vm1, %v566_v15  ;;  %555 = vmatpush.msk.msrb.mxu0 %vm344_vm6, %v337_v57 }
  0x21   :  { %288 = vperm.xlu0 %577, %v283_v25   ;;  %221 = vmatpush.bf16.msra.mxu2 %v571_v46 }
  0x24   :  { %551 = vmatmul.msk.bf16.vlgmr.msra.gmra.mxu2 %vm117_vm1, %v566_v15 }
  0x8b   :  { %v282_v45 = vpop.permute.xlu0 %281 }
  0x8c   :  { %vm290_vm3 = vcmp.gt.f32.partialorder %v282_v45, 0.0 }
  0x93   :  { %v289_v51 = vpop.permute.xlu0 %288 }
  0x94   :  { %vm291_vm5 = vcmp.gt.f32.partialorder %v289_v51, 0.0 }
  0x9b   :  { %v134_v28 = vpop.f32.mrf.mxu0 }
  0x9c   :  { %v182_v29 = vpop.f32.mrf.mxu1  ;;  %v135_v30 = vadd.f32 %v578_v26, %v134_v28  ;;  %v392_v28 = vld [vmem:[%s908_s11 + $0x28] sm:$0xff] }
  0x9d   :  { %v183_v31 = vadd.f32 %v579_v27, %v182_v29  ;;  %v391_v29 = vld [vmem:[%s908_s11 + $0x20] sm:$0xff] }
  0x9e   :  { %v230_v32 = vperm.slane %v135_v30, 0  ;;  %v229_v34 = vrot.slane %v135_v30, 1  ;;  %v390_v30 = vld [vmem:[%s908_s11 + $0x18] sm:$0xff] }
  0xa0   :  { %v234_v33 = vmul.f32 %v230_v32, %v183_v31  ;;  %v231_v38 = vperm.slane %v229_v34, 0  ;;  %v389_v31 = vld [vmem:[%s908_s11 + $0x10] sm:$0xff]  ;;  %v388_v32 = vld [vmem:[%s908_s11 + $0x8] sm:$0xff]  ;;  %v580_v34 = vld [vmem:[%s905_s8] ss:$0 sm:$0xff] }
  0xa2   :  { %553 = vmatmul.msk.f32.vlgmr.msra.gmra.mxu3 %vm243_vm2, %v234_v33  ;;  %v387_v33 = vld [vmem:[%s908_s11] sm:$0xff] }
  0xa3   :  { %v136_v35 = vpop.f32.mrf.mxu0 }
  0xa4   :  { %v184_v36 = vpop.f32.mrf.mxu1 }
  0xa5   :  { %v185_v37 = vadd.f32 %v579_v27, %v184_v36  ;;  %v393_v27 = vld [vmem:[%s908_s11 + $0x30] sm:$0x3] }
  0xa6   :  { %558 = vmatpush.msk.msrb.mxu1 %vm121_vm0, %v393_v27 }
  0xa7   :  { %v235_v39 = vmul.f32 %v231_v38, %v185_v37  ;;  %v223_v35 = vpop.f32.mrf.mxu2 }
  0xa8   :  { %417 = vmatpush.msrb.mxu1 %v392_v28  ;;  %v224_v36 = vadd.f32 %v580_v34, %v223_v35 }
  0xaa   :  { %554 = vmatmul.msk.f32.gmra.mxu3 %vm243_vm2, %v235_v39  ;;  %418 = vmatpush.msrb.mxu1 %v391_v29 }
  0xac   :  { %419 = vmatpush.msrb.mxu1 %v390_v30 }
  0xae   :  { %420 = vmatpush.msrb.mxu1 %v389_v31 }
  0xaf   :  { %v225_v40 = vpop.f32.mrf.mxu2 }
  0xb0   :  { %421 = vmatpush.msrb.mxu1 %v388_v32  ;;  %v226_v43 = vadd.f32 %v580_v34, %v225_v40 }
  0xb2   :  { %422 = vmatpush.msrb.mxu1 %v387_v33 }
 0x125   :  { %v270_v47 = vpop.f32.mrf.mxu3 }
 0x126   :  { %v296_v48 = vsel %vm290_vm3, %v270_v47, -1e+30 }
 0x127   :  { %v299_v49 = vsel %vm298_vm4, %v296_v48, -inf }
 0x128   :  { %v300_v50 = vrot.slane %v299_v49, 4 }
 0x12a   :  { %v301_v52 = vmax.f32 %v299_v49, %v300_v50 }
 0x12c   :  { %v302_v53 = vrot.slane %v301_v52, 2 }
 0x12d   :  { %v273_v54 = vpop.f32.mrf.mxu3 }
 0x12e   :  { %v303_v55 = vmax.f32 %v301_v52, %v302_v53  ;;  %v297_v56 = vsel %vm291_vm5, %v273_v54, -1e+30 }
 0x12f   :  { %v306_v58 = vsel %vm298_vm4, %v297_v56, -inf }
 0x130   :  { %v304_v59 = vrot.slane %v303_v55, 1  ;;  %v307_v60 = vrot.slane %v306_v58, 4 }
 0x132   :  { %v305_v61 = vmax.f32 %v303_v55, %v304_v59  ;;  %v308_v62 = vmax.f32 %v306_v58, %v307_v60  ;;  %v439_v58 = vld [vmem:[%s910_s13 + $0x30] sm:$0x3]  ;;  %v438_v59 = vld [vmem:[%s910_s13 + $0x28] sm:$0xff]  ;;  %v437_v60 = vld [vmem:[%s910_s13 + $0x20] sm:$0xff] }
 0x133   :  { %561 = vmatpush.msk.msrb.mxu2 %vm121_vm0, %v439_v58 }
 0x134   :  { %v313_v63 = vsub.f32 %v296_v48, %v305_v61  ;;  %v309_v0 = vrot.slane %v308_v62, 2  ;;  %v436_v61 = vld [vmem:[%s910_s13 + $0x18] sm:$0xff] }
 0x135   :  { %460 = vmatpush.msrb.mxu2 %v438_v59 }
 0x136   :  { %v315_v1 = vmul.f32 1.442695, %v313_v63  ;;  %v310_v2 = vmax.f32 %v308_v62, %v309_v0  ;;  %v435_v62 = vld [vmem:[%s910_s13 + $0x10] sm:$0xff]  ;;  %v434_v63 = vld [vmem:[%s910_s13 + $0x8] sm:$0xff]  ;;  %v433_v0 = vld [vmem:[%s910_s13] sm:$0xff] }
 0x137   :  { %461 = vmatpush.msrb.mxu2 %v437_v60 }
 0x138   :  { %584 = vpow2.f32 %v315_v1  ;;  %v311_v3 = vrot.slane %v310_v2, 1  ;;  %v581_v1 = vld [vmem:[%s909_s12] ss:$0 sm:$0xff] }
 0x139   :  { %462 = vmatpush.msrb.mxu2 %v436_v61 }
 0x13a   :  { %v312_v4 = vmax.f32 %v310_v2, %v311_v3 }
 0x13b   :  { %463 = vmatpush.msrb.mxu2 %v435_v62 }
 0x13c   :  { %v314_v5 = vsub.f32 %v297_v56, %v312_v4 }
 0x13d   :  { %464 = vmatpush.msrb.mxu2 %v434_v63 }
 0x13e   :  { %v585_v6 = vpop.eup %584  ;;  %v317_v7 = vmul.f32 1.442695, %v314_v5 }
 0x13f   :  { %v319_v8 = vsel %vm298_vm4, %v585_v6, 0.0  ;;  %465 = vmatpush.msrb.mxu2 %v433_v0 }
 0x140   :  { %v320_v9 = vrot.slane %v319_v8, 4  ;;  %586 = vpow2.f32 %v317_v7 }
 0x142   :  { %v321_v10 = vadd.f32 %v320_v9, %v319_v8  ;;  %v482_v9 = vld [vmem:[%s912_s15 + $0x30] sm:$0x3] }
 0x143   :  { %564 = vmatpush.msk.msrb.mxu3 %vm121_vm0, %v482_v9 }
 0x144   :  { %v322_v11 = vrot.slane %v321_v10, 2 }
 0x146   :  { %v587_v12 = vpop.eup %586  ;;  %v323_v13 = vadd.f32 %v322_v11, %v321_v10  ;;  %v481_v10 = vld [vmem:[%s912_s15 + $0x28] sm:$0xff]  ;;  %v480_v11 = vld [vmem:[%s912_s15 + $0x20] sm:$0xff] }
 0x147   :  { %v326_v14 = vsel %vm298_vm4, %v587_v12, 0.0  ;;  %503 = vmatpush.msrb.mxu3 %v481_v10 }
 0x148   :  { %v324_v15 = vrot.slane %v323_v13, 1  ;;  %v327_v16 = vrot.slane %v326_v14, 4 }
 0x149   :  { %504 = vmatpush.msrb.mxu3 %v480_v11 }
 0x14a   :  { %v325_v17 = vadd.f32 %v324_v15, %v323_v13  ;;  %v328_v18 = vadd.f32 %v327_v16, %v326_v14  ;;  %v478_v13 = vld [vmem:[%s912_s15 + $0x10] sm:$0xff]  ;;  %v477_v14 = vld [vmem:[%s912_s15 + $0x8] sm:$0xff]  ;;  %v476_v15 = vld [vmem:[%s912_s15] sm:$0xff] }
 0x14b   :  { %v582_v16 = vld [vmem:[%s911_s14] ss:$0 sm:$0xff] }
 0x14c   :  { %v329_v19 = vrot.slane %v328_v18, 2  ;;  %588 = vrcp.f32 %v325_v17 }
 0x14e   :  { %v330_v20 = vadd.f32 %v329_v19, %v328_v18 }
 0x150   :  { %v331_v21 = vrot.slane %v330_v20, 1 }
 0x152   :  { %v589_v22 = vpop.eup %588  ;;  %v332_v23 = vadd.f32 %v331_v21, %v330_v20 }
 0x153   :  { %v335_v24 = vmul.f32 %v589_v22, %v585_v6 }
 0x154   :  { %590 = vrcp.f32 %v332_v23 }
 0x155   :  { %556 = vmatmul.msk.f32.vlgmr.msrb.gmra.mxu0 %vm298_vm4, %v335_v24  ;;  %v583_v24 = vld [vmem:[%s913_s16] ss:$0 sm:$0xff] }
 0x15a   :  { %v591_v25 = vpop.eup %590 }
 0x15b   :  { %v336_v26 = vmul.f32 %v591_v25, %v587_v12  ;;  %v479_v12 = vld [vmem:[%s912_s15 + $0x18] sm:$0xff] }
 0x15c   :  { %505 = vmatpush.msrb.mxu3 %v479_v12 }
 0x15d   :  { %557 = vmatmul.msk.f32.gmra.mxu0 %vm298_vm4, %v336_v26 }
 0x15e   :  { %506 = vmatpush.msrb.mxu3 %v478_v13 }
 0x160   :  { %507 = vmatpush.msrb.mxu3 %v477_v14 }
 0x162   :  { %508 = vmatpush.msrb.mxu3 %v476_v15 }
 0x1d2   :  { %v365_v37 = vpop.f32.mrf.mxu0 }
 0x1d3   :  { %v371_v38 = vmul.f32 %v365_v37, %v224_v36 }
 0x1d5   :  { %v373_v39 = vsel %vm243_vm2, %v371_v38, 0.0 }
 0x1d6   :  { %v374_v41 = vrot.slane %v373_v39, 4 }
 0x1d8   :  { %v375_v42 = vadd.f32 %v374_v41, %v373_v39 }
 0x1da   :  { %v368_v44 = vpop.f32.mrf.mxu0  ;;  %v376_v46 = vrot.slane %v375_v42, 2 }
 0x1db   :  { %v372_v45 = vmul.f32 %v368_v44, %v226_v43 }
 0x1dc   :  { %v377_v49 = vadd.f32 %v376_v46, %v375_v42 }
 0x1dd   :  { %v380_v47 = vsel %vm243_vm2, %v372_v45, 0.0 }
 0x1de   :  { %v381_v48 = vrot.slane %v380_v47, 4  ;;  %v378_v52 = vrot.slane %v377_v49, 1 }
 0x1e0   :  { %v382_v50 = vadd.f32 %v381_v48, %v380_v47  ;;  %v379_v55 = vadd.f32 %v378_v52, %v377_v49 }
 0x1e2   :  { %v383_v51 = vrot.slane %v382_v50, 2 }
 0x1e4   :  { %v384_v53 = vadd.f32 %v383_v51, %v382_v50 }
 0x1e6   :  { %v385_v54 = vrot.slane %v384_v53, 1 }
 0x1e8   :  { %v386_v56 = vadd.f32 %v385_v54, %v384_v53 }
 0x1ea   :  { %v401_v57 = vsel %vm400_vm7, %v386_v56, %v379_v55 }
 0x1eb   :  { %559 = vmatmul.msk.f32.vlgmr.msrb.gmra.mxu1 %vm243_vm2, %v401_v57 }
 0x268   :  { %v424_v2 = vpop.f32.mrf.mxu1 }
 0x269   :  { %v425_v3 = vadd.f32 %v581_v1, %v424_v2 }
 0x26b   :  { %v428_v4 = vmin.f32 %v425_v3, 0.0  ;;  %vm427_vm8 = vcmp.gt.f32.partialorder %v425_v3, 0.0 }
 0x26d   :  { %v429_v5 = vmul.f32 1.442695, %v428_v4 }
 0x26f   :  { %592 = vpow2.f32 %v429_v5 }
 0x275   :  { %v593_v6 = vpop.eup %592 }
 0x276   :  { %v560_v7 = vadd.f32 -1.0, %v593_v6 }
 0x278   :  { %v432_v8 = vsel %vm427_vm8, %v425_v3, %v560_v7 }
 0x279   :  { %562 = vmatmul.msk.f32.vlgmr.msrb.gmra.mxu2 %vm243_vm2, %v432_v8 }
 0x2fc   :  { %v467_v17 = vpop.f32.mrf.mxu2 }
 0x2fd   :  { %v468_v18 = vadd.f32 %v582_v16, %v467_v17 }
 0x2ff   :  { %v471_v19 = vmin.f32 %v468_v18, 0.0  ;;  %vm470_vm9 = vcmp.gt.f32.partialorder %v468_v18, 0.0 }
 0x301   :  { %v472_v20 = vmul.f32 1.442695, %v471_v19 }
 0x303   :  { %594 = vpow2.f32 %v472_v20 }
 0x309   :  { %v595_v21 = vpop.eup %594 }
 0x30a   :  { %v563_v22 = vadd.f32 -1.0, %v595_v21 }
 0x30c   :  { %v475_v23 = vsel %vm470_vm9, %v468_v18, %v563_v22 }
 0x30d   :  { %565 = vmatmul.msk.f32.vlgmr.msrb.gmra.mxu3 %vm243_vm2, %v475_v23 }
 0x390   :  { %v510_v25 = vpop.f32.mrf.mxu3 }
 0x391   :  { %v511_v26 = vadd.f32 %v583_v24, %v510_v25 }
 0x393   :  { %514 = vst.msk [vmem:[%s914_s17] sm:$0x3] %vm513_vm10, %v511_v26 }
 0x394   :  { %519 = vsyncpa [#allocation3], 1 }
 0x395   :  { %520 = vsyncpa [#allocation5], 1 }

</bundles_post_ra>
